<compile_context>
chip_gen: v6e
topology: v6e:2x2x1
jax: 0.10.0
libtpu: 0.0.40
codegen_flags: <defaults>
</compile_context>

<pallas_src>
import functools

import jax
import jax.numpy as jnp
from jax.experimental import pallas as pl
from jax.experimental.pallas import tpu as pltpu


def _round_up(x, m):
    return ((x + m - 1) // m) * m


# -----------------------------------------------------------------------------
# Kernel
# -----------------------------------------------------------------------------
def _decoder_lstm_kernel(tok_ref,            # SMEM scalar-prefetch: (T,) int32
                         xe_ref,             # (1, 1, Hp) embedding row of token t
                         state0_ref,         # (1, 2*Hp)  packed [h0 | c0]
                         wcat_ref,           # (2*Hp, 4*Hp)  [W_ih^T ; W_hh^T], gate-block columns
                         b_ref,              # (1, 4*Hp)     b_ih + b_hh (gate-block padded)
                         wout_ref,           # (Hp, Op)      W_out^T
                         bout_ref,           # (1, Op)       b_out (pad lanes = -1e30)
                         logp_ref,           # out: (1, 1, Op) block of (T, 1, Op)
                         state1_ref,         # out: (1, 2*Hp) packed [hT | cT]
                         h_scr, c_scr,       # VMEM scratch (1, Hp) each
                         *, hp):
    del tok_ref  # only used by the index_maps (data-dependent embedding row)
    t = pl.program_id(0)
    n = pl.num_programs(0)

    # Load the initial recurrent state once; it lives in VMEM scratch afterwards.
    @pl.when(t == 0)
    def _():
        h_scr[...] = state0_ref[:, :hp]
        c_scr[...] = state0_ref[:, hp:]

    # x = relu(embedding(token_t))
    x = jnp.maximum(xe_ref[0], 0.0)                       # (1, Hp)
    h = h_scr[...]                                        # (1, Hp)
    c = c_scr[...]                                        # (1, Hp)

    # Fused gate matmul: gates = [x, h] @ [W_ih^T ; W_hh^T] + (b_ih + b_hh)
    xh = jnp.concatenate([x, h], axis=1)                  # (1, 2*Hp)
    gates = jnp.dot(xh.astype(wcat_ref.dtype), wcat_ref[...],
                    preferred_element_type=jnp.float32) + b_ref[...]   # (1, 4*Hp)

    # Full-vreg transcendentals, then lane-tile-aligned gate slices (PyTorch i,f,g,o).
    sig = jax.nn.sigmoid(gates)
    th = jnp.tanh(gates)
    i_g = sig[:, 0 * hp:1 * hp]
    f_g = sig[:, 1 * hp:2 * hp]
    g_g = th[:, 2 * hp:3 * hp]
    o_g = sig[:, 3 * hp:4 * hp]

    c1 = f_g * c + i_g * g_g                              # (1, Hp)
    h1 = o_g * jnp.tanh(c1)                               # (1, Hp)

    # Output projection + log-softmax (padded logits carry bias -1e30 -> exp == 0).
    logits = jnp.dot(h1.astype(wout_ref.dtype), wout_ref[...],
                     preferred_element_type=jnp.float32) + bout_ref[...]   # (1, Op)
    m = jnp.max(logits, axis=1, keepdims=True)
    z = logits - m
    lse = jnp.log(jnp.sum(jnp.exp(z), axis=1, keepdims=True))
    logp_ref[0] = (z - lse).astype(logp_ref.dtype)        # lane-dense (1, Op) store

    # Carry recurrent state in VMEM scratch.
    h_scr[...] = h1
    c_scr[...] = c1

    # Write the final state once, packed lane-dense into a single row.
    @pl.when(t == n - 1)
    def _():
        state1_ref[:, :hp] = h1
        state1_ref[:, hp:] = c1


# -----------------------------------------------------------------------------
# One-time parameter preparation (transposes, bias fusion, 128-lane padding)
# -----------------------------------------------------------------------------
def prepare_params(params, hidden_size, output_size, param_dtype=jnp.float32):
    """Hoisted out of the decode step: do layout work exactly once.

    param_dtype=jnp.bfloat16 halves weight DMA on v6e/v7x (accumulation and the
    softmax stay float32 inside the kernel); float32 keeps bit-for-bit parity
    with the PyTorch/f32 reference (recommended on v5e).
    """
    H, O = hidden_size, output_size
    Hp = _round_up(H, 128)
    Op = _round_up(O, 128)

    def pad_gate_wT(w):
        # w: (4H, H) PyTorch layout (gates i,f,g,o stacked) -> (Hp, 4*Hp) with
        # each gate occupying its own lane-aligned Hp-wide column block.
        w4 = w.reshape(4, H, H).transpose(0, 2, 1)                   # (4, H_in, H_gate)
        w4p = jnp.zeros((4, Hp, Hp), w.dtype).at[:, :H, :H].set(w4)
        return w4p.transpose(1, 0, 2).reshape(Hp, 4 * Hp)

    w_cat = jnp.concatenate([pad_gate_wT(params["w_ih"]),
                             pad_gate_wT(params["w_hh"])], axis=0)   # (2Hp, 4Hp)

    b = (params["b_ih"] + params["b_hh"]).astype(jnp.float32).reshape(4, H)
    b = jnp.zeros((4, Hp), jnp.float32).at[:, :H].set(b).reshape(1, 4 * Hp)

    w_out = jnp.zeros((Hp, Op), params["w_out"].dtype).at[:H, :O].set(params["w_out"].T)
    b_out = jnp.full((1, Op), -1e30, jnp.float32).at[0, :O].set(
        params["b_out"].astype(jnp.float32))

    # Embedding stored as (O, 1, Hp) so a single row is a full (1, Hp) lane tile.
    emb = jnp.zeros((O, 1, Hp), jnp.float32).at[:, 0, :H].set(
        params["emb"].astype(jnp.float32))

    return {
        "emb": emb,
        "w_cat": w_cat.astype(param_dtype),
        "b": b,
        "w_out": w_out.astype(param_dtype),
        "b_out": b_out,
    }


# -----------------------------------------------------------------------------
# Fused multi-step decode (teacher-forced token sequence) + single-step wrapper
# -----------------------------------------------------------------------------
def decoder_lstm_decode(tokens, hidden, prep, *, hidden_size, output_size):
    """tokens: (T,) int32; hidden = (h0, c0) each (1, 1, H).

    Returns (log_probs (T, O), (hT (1,1,H), cT (1,1,H))). Each step reproduces
    the PyTorch module's forward exactly (T=1 == one module call).
    """
    H, O = hidden_size, output_size
    Hp, Op = prep["w_out"].shape
    T = tokens.shape[0]

    h0 = hidden[0].reshape(1, H).astype(jnp.float32)
    c0 = hidden[1].reshape(1, H).astype(jnp.float32)
    state0 = (jnp.zeros((1, 2 * Hp), jnp.float32)
              .at[:, :H].set(h0)
              .at[:, Hp:Hp + H].set(c0))

    wbytes = (prep["w_cat"].size * prep["w_cat"].dtype.itemsize
              + prep["w_out"].size * prep["w_out"].dtype.itemsize
              + 4 * (4 * Hp + Op + 2 * Hp))
    cost = pl.CostEstimate(
        flops=int(T * 2 * (2 * Hp * 4 * Hp + Hp * Op)),
        transcendentals=int(T * (8 * Hp + Hp + Op + 8)),
        bytes_accessed=int(wbytes + T * 4 * (Hp + Op)),
    )

    grid_spec = pltpu.PrefetchScalarGridSpec(
        num_scalar_prefetch=1,            # tokens -> SMEM, drives the embedding row gather
        grid=(T,),
        in_specs=[
            # embedding row of token t (data-dependent block index)
            pl.BlockSpec((1, 1, Hp), lambda t, tok: (tok[t], 0, 0)),
            # everything below: constant index_map => DMA'd once, resident in VMEM
            pl.BlockSpec((1, 2 * Hp), lambda t, tok: (0, 0)),
            pl.BlockSpec((2 * Hp, 4 * Hp), lambda t, tok: (0, 0)),
            pl.BlockSpec((1, 4 * Hp), lambda t, tok: (0, 0)),
            pl.BlockSpec((Hp, Op), lambda t, tok: (0, 0)),
            pl.BlockSpec((1, Op), lambda t, tok: (0, 0)),
        ],
        out_specs=[
            pl.BlockSpec((1, 1, Op), lambda t, tok: (t, 0, 0)),   # per-step log-probs
            pl.BlockSpec((1, 2 * Hp), lambda t, tok: (0, 0)),     # final packed [hT | cT]
        ],
        scratch_shapes=[pltpu.VMEM((1, Hp), jnp.float32),
                        pltpu.VMEM((1, Hp), jnp.float32)],
    )

    logp, state1 = pl.pallas_call(
        functools.partial(_decoder_lstm_kernel, hp=Hp),
        grid_spec=grid_spec,
        out_shape=(jax.ShapeDtypeStruct((T, 1, Op), jnp.float32),
                   jax.ShapeDtypeStruct((1, 2 * Hp), jnp.float32)),
        compiler_params=pltpu.CompilerParams(
            dimension_semantics=("arbitrary",)),   # recurrent: must stay sequential
        cost_estimate=cost,
    )(tokens.astype(jnp.int32), prep["emb"], state0,
      prep["w_cat"], prep["b"], prep["w_out"], prep["b_out"])

    log_probs = logp.reshape(T, Op)[:, :O]
    hT = state1[:, :H].reshape(1, 1, H)
    cT = state1[:, Hp:Hp + H].reshape(1, 1, H)
    return log_probs, (hT, cT)


def decoder_lstm_forward(x_token, hidden, prep, *, hidden_size, output_size):
    """Single-step API matching the PyTorch module's forward(x, hidden)."""
    tokens = jnp.reshape(x_token, (1,)).astype(jnp.int32)
    log_probs, hid = decoder_lstm_decode(tokens, hidden, prep,
                                         hidden_size=hidden_size,
                                         output_size=output_size)
    return log_probs, hid            # (1, O), ((1,1,H), (1,1,H))


# -----------------------------------------------------------------------------
# Reference (pure JAX) and synthetic params
# -----------------------------------------------------------------------------
def init_params(key, hidden_size, output_size):
    H, O = hidden_size, output_size
    ks = jax.random.split(key, 7)
    s = 1.0 / jnp.sqrt(H)
    return {
        "emb":   jax.random.normal(ks[0], (O, H), jnp.float32),
        "w_ih":  jax.random.uniform(ks[1], (4 * H, H), jnp.float32, -s, s),
        "w_hh":  jax.random.uniform(ks[2], (4 * H, H), jnp.float32, -s, s),
        "b_ih":  jax.random.uniform(ks[3], (4 * H,), jnp.float32, -s, s),
        "b_hh":  jax.random.uniform(ks[4], (4 * H,), jnp.float32, -s, s),
        "w_out": jax.random.uniform(ks[5], (O, H), jnp.float32, -s, s),
        "b_out": jax.random.uniform(ks[6], (O,), jnp.float32, -s, s),
    }


def _reference_decode(tokens, h0, c0, params):
    emb, w_ih, w_hh = params["emb"], params["w_ih"], params["w_hh"]
    b_ih, b_hh, w_out, b_out = params["b_ih"], params["b_hh"], params["w_out"], params["b_out"]
    h = h0.reshape(1, -1)
    c = c0.reshape(1, -1)
    outs = []
    for i in range(tokens.shape[0]):
        x = jnp.maximum(emb[tokens[i]][None, :], 0.0)
        gates = x @ w_ih.T + h @ w_hh.T + b_ih + b_hh
        ig, fg, gg, og = jnp.split(gates, 4, axis=1)
        ig, fg, og = jax.nn.sigmoid(ig), jax.nn.sigmoid(fg), jax.nn.sigmoid(og)
        gg = jnp.tanh(gg)
        c = fg * c + ig * gg
        h = og * jnp.tanh(c)
        logits = h @ w_out.T + b_out
        outs.append(jax.nn.log_softmax(logits, axis=1))
    return jnp.concatenate(outs, axis=0), h, c


# -----------------------------------------------------------------------------
if __name__ == "__main__":
    hidden_size = 32
    output_size = 64
    T = 8

    key = jax.random.PRNGKey(0)
    params = init_params(key, hidden_size, output_size)
    prep = prepare_params(params, hidden_size, output_size)   # one-time layout work

    tokens = jax.random.randint(jax.random.PRNGKey(1), (T,), 0, output_size, jnp.int32)
    h0 = jnp.zeros((1, 1, hidden_size), jnp.float32)
    c0 = jnp.zeros((1, 1, hidden_size), jnp.float32)

    decode = jax.jit(functools.partial(decoder_lstm_decode,
                                       hidden_size=hidden_size,
                                       output_size=output_size))
    log_probs, (hT, cT) = decode(tokens, (h0, c0), prep)
    jax.block_until_ready((log_probs, hT, cT))

    # Correctness vs pure-JAX reference of the PyTorch module applied T times.
    ref_lp, ref_h, ref_c = _reference_decode(tokens, h0, c0, params)
    assert log_probs.shape == (T, output_size)
    assert hT.shape == (1, 1, hidden_size) and cT.shape == (1, 1, hidden_size)
    assert bool(jnp.allclose(jnp.sum(jnp.exp(log_probs), axis=1), 1.0, atol=1e-4))
    assert bool(jnp.allclose(log_probs, ref_lp, atol=1e-4, rtol=1e-4))
    assert bool(jnp.allclose(hT.reshape(1, -1), ref_h, atol=1e-5, rtol=1e-5))
    assert bool(jnp.allclose(cT.reshape(1, -1), ref_c, atol=1e-5, rtol=1e-5))

    # Single-step API (exactly the module's forward signature / semantics).
    lp1, (h1, c1) = decoder_lstm_forward(tokens[0], (h0, c0), prep,
                                         hidden_size=hidden_size,
                                         output_size=output_size)
    jax.block_until_ready((lp1, h1, c1))
    assert lp1.shape == (1, output_size)
    assert bool(jnp.allclose(lp1, ref_lp[:1], atol=1e-4, rtol=1e-4))

    print("KERNEL_OK")
</pallas_src>

<mosaic_0001>
module attributes {stable_mosaic.version = 11 : i64} {
  func.func @_decoder_lstm_kernel(%arg0: i32, %arg1: memref<8xi32, #tpu.memory_space<smem>>, %arg2: memref<1x1x128xf32, #tpu.memory_space<vmem>>, %arg3: memref<1x256xf32, #tpu.memory_space<vmem>>, %arg4: memref<256x512xf32, #tpu.memory_space<vmem>>, %arg5: memref<1x512xf32, #tpu.memory_space<vmem>>, %arg6: memref<128x128xf32, #tpu.memory_space<vmem>>, %arg7: memref<1x128xf32, #tpu.memory_space<vmem>>, %arg8: memref<1x1x128xf32, #tpu.memory_space<vmem>>, %arg9: memref<1x256xf32, #tpu.memory_space<vmem>>, %arg10: memref<1x128xf32, #tpu.memory_space<vmem>>, %arg11: memref<1x128xf32, #tpu.memory_space<vmem>>) attributes {dimension_semantics = [#tpu.dimension_semantics<arbitrary>], iteration_bounds = array<i64: 8>, scalar_prefetch = 1 : i64, scratch_operands = 2 : i64, tpu.core_type = #tpu.core_type<tc>, window_params = [{transform_indices = @transform_0, window_bounds = array<i64: 1, 1, 128>}, {pipeline_mode = #tpu.pipeline_mode<synchronous>, transform_indices = @transform_1, window_bounds = array<i64: 1, 256>}, {pipeline_mode = #tpu.pipeline_mode<synchronous>, transform_indices = @transform_2, window_bounds = array<i64: 256, 512>}, {pipeline_mode = #tpu.pipeline_mode<synchronous>, transform_indices = @transform_3, window_bounds = array<i64: 1, 512>}, {pipeline_mode = #tpu.pipeline_mode<synchronous>, transform_indices = @transform_4, window_bounds = array<i64: 128, 128>}, {pipeline_mode = #tpu.pipeline_mode<synchronous>, transform_indices = @transform_5, window_bounds = array<i64: 1, 128>}, {transform_indices = @transform_6, window_bounds = array<i64: 1, 1, 128>}, {pipeline_mode = #tpu.pipeline_mode<synchronous>, transform_indices = @transform_7, window_bounds = array<i64: 1, 256>}]} {
    %c0_i32 = arith.constant 0 : i32
    %0 = arith.cmpi eq, %arg0, %c0_i32 : i32
    %1 = arith.extui %0 : i1 to i32
    %c0_i32_0 = arith.constant 0 : i32
    %2 = arith.cmpi ne, %1, %c0_i32_0 : i32
    scf.if %2 {
      %c0_28 = arith.constant 0 : index
      %c0_29 = arith.constant 0 : index
      %51 = vector.load %arg3[%c0_28, %c0_29] : memref<1x256xf32, #tpu.memory_space<vmem>>, vector<1x128xf32>
      %c0_30 = arith.constant 0 : index
      %c0_31 = arith.constant 0 : index
      %52 = vector.load %arg10[%c0_30, %c0_31] : memref<1x128xf32, #tpu.memory_space<vmem>>, vector<1x128xf32>
      tpu.vector_store %arg10[%c0_30, %c0_31], %51 {strides = array<i32>} : memref<1x128xf32, #tpu.memory_space<vmem>>, vector<1x128xf32>,
      %c0_32 = arith.constant 0 : index
      %c128 = arith.constant 128 : index
      %53 = vector.load %arg3[%c0_32, %c128] : memref<1x256xf32, #tpu.memory_space<vmem>>, vector<1x128xf32>
      %c0_33 = arith.constant 0 : index
      %c0_34 = arith.constant 0 : index
      %54 = vector.load %arg11[%c0_33, %c0_34] : memref<1x128xf32, #tpu.memory_space<vmem>>, vector<1x128xf32>
      tpu.vector_store %arg11[%c0_33, %c0_34], %53 {strides = array<i32>} : memref<1x128xf32, #tpu.memory_space<vmem>>, vector<1x128xf32>,
    } else {
    }
    %c0 = arith.constant 0 : index
    %c0_1 = arith.constant 0 : index
    %c0_2 = arith.constant 0 : index
    %3 = vector.load %arg2[%c0, %c0_1, %c0_2] : memref<1x1x128xf32, #tpu.memory_space<vmem>>, vector<1x1x128xf32>
    %4 = vector.shape_cast %3 : vector<1x1x128xf32> to vector<1x128xf32>
    %cst = arith.constant 0.000000e+00 : f32
    %5 = vector.broadcast %cst : f32 to vector<1x128xf32>
    %6 = arith.maximumf %4, %5 : vector<1x128xf32>
    %c0_3 = arith.constant 0 : index
    %c0_4 = arith.constant 0 : index
    %7 = vector.load %arg10[%c0_3, %c0_4] : memref<1x128xf32, #tpu.memory_space<vmem>>, vector<1x128xf32>
    %c0_5 = arith.constant 0 : index
    %c0_6 = arith.constant 0 : index
    %8 = vector.load %arg11[%c0_5, %c0_6] : memref<1x128xf32, #tpu.memory_space<vmem>>, vector<1x128xf32>
    %9 = tpu.concatenate %6, %7 in 1 : vector<1x128xf32>, vector<1x128xf32> -> vector<1x256xf32>
    %c0_7 = arith.constant 0 : index
    %c0_8 = arith.constant 0 : index
    %10 = vector.load %arg4[%c0_7, %c0_8] : memref<256x512xf32, #tpu.memory_space<vmem>>, vector<256x512xf32>
    %cst_9 = arith.constant dense<0.000000e+00> : vector<1x512xf32>
    %11 = tpu.matmul %9, %10, %cst_9 {dimension_numbers = #tpu.dot_dimension_numbers<[1], [0], [0], [1], [0, 0, 1, 1], [], []>} : vector<1x256xf32>, vector<256x512xf32>, vector<1x512xf32> -> vector<1x512xf32>
    %c0_10 = arith.constant 0 : index
    %c0_11 = arith.constant 0 : index
    %12 = vector.load %arg5[%c0_10, %c0_11] : memref<1x512xf32, #tpu.memory_space<vmem>>, vector<1x512xf32>
    %13 = arith.addf %11, %12 : vector<1x512xf32>
    %14 = arith.negf %13 : vector<1x512xf32>
    %15 = math.exp %14 : vector<1x512xf32>
    %cst_12 = arith.constant 1.000000e+00 : f32
    %16 = vector.broadcast %cst_12 : f32 to vector<1x512xf32>
    %17 = arith.addf %16, %15 : vector<1x512xf32>
    %18 = arith.divf %16, %17 : vector<1x512xf32>
    %19 = math.tanh %13 : vector<1x512xf32>
    %20 = vector.extract_strided_slice %18 {offsets = [0, 0], sizes = [1, 128], strides = [1, 1]} : vector<1x512xf32> to vector<1x128xf32>
    %21 = vector.extract_strided_slice %18 {offsets = [0, 128], sizes = [1, 128], strides = [1, 1]} : vector<1x512xf32> to vector<1x128xf32>
    %22 = vector.extract_strided_slice %19 {offsets = [0, 256], sizes = [1, 128], strides = [1, 1]} : vector<1x512xf32> to vector<1x128xf32>
    %23 = vector.extract_strided_slice %18 {offsets = [0, 384], sizes = [1, 128], strides = [1, 1]} : vector<1x512xf32> to vector<1x128xf32>
    %24 = arith.mulf %21, %8 : vector<1x128xf32>
    %25 = arith.mulf %20, %22 : vector<1x128xf32>
    %26 = arith.addf %24, %25 : vector<1x128xf32>
    %27 = math.tanh %26 : vector<1x128xf32>
    %28 = arith.mulf %23, %27 : vector<1x128xf32>
    %c0_13 = arith.constant 0 : index
    %c0_14 = arith.constant 0 : index
    %29 = vector.load %arg6[%c0_13, %c0_14] : memref<128x128xf32, #tpu.memory_space<vmem>>, vector<128x128xf32>
    %cst_15 = arith.constant dense<0.000000e+00> : vector<1x128xf32>
    %30 = tpu.matmul %28, %29, %cst_15 {dimension_numbers = #tpu.dot_dimension_numbers<[1], [0], [0], [1], [0, 0, 1, 1], [], []>} : vector<1x128xf32>, vector<128x128xf32>, vector<1x128xf32> -> vector<1x128xf32>
    %c0_16 = arith.constant 0 : index
    %c0_17 = arith.constant 0 : index
    %31 = vector.load %arg7[%c0_16, %c0_17] : memref<1x128xf32, #tpu.memory_space<vmem>>, vector<1x128xf32>
    %32 = arith.addf %30, %31 : vector<1x128xf32>
    %cst_18 = arith.constant dense<0xFF800000> : vector<1xf32>
    %33 = vector.multi_reduction <maximumf>, %32, %cst_18 [1] : vector<1x128xf32> to vector<1xf32>
    %34 = vector.shape_cast %33 : vector<1xf32> to vector<1x1xf32>
    %35 = vector.broadcast %34 : vector<1x1xf32> to vector<1x128xf32>
    %36 = arith.subf %32, %35 : vector<1x128xf32>
    %37 = math.exp %36 : vector<1x128xf32>
    %cst_19 = arith.constant dense<0.000000e+00> : vector<1xf32>
    %38 = vector.multi_reduction <add>, %37, %cst_19 [1] : vector<1x128xf32> to vector<1xf32>
    %39 = vector.shape_cast %38 : vector<1xf32> to vector<1x1xf32>
    %40 = math.log %39 : vector<1x1xf32>
    %41 = vector.broadcast %40 : vector<1x1xf32> to vector<1x128xf32>
    %42 = arith.subf %36, %41 : vector<1x128xf32>
    %c0_20 = arith.constant 0 : index
    %c0_21 = arith.constant 0 : index
    %c0_22 = arith.constant 0 : index
    %43 = vector.load %arg8[%c0_20, %c0_21, %c0_22] : memref<1x1x128xf32, #tpu.memory_space<vmem>>, vector<1x1x128xf32>
    %44 = vector.shape_cast %43 : vector<1x1x128xf32> to vector<1x128xf32>
    %45 = vector.shape_cast %42 : vector<1x128xf32> to vector<1x1x128xf32>
    tpu.vector_store %arg8[%c0_20, %c0_21, %c0_22], %45 {strides = array<i32>} : memref<1x1x128xf32, #tpu.memory_space<vmem>>, vector<1x1x128xf32>,
    %c0_23 = arith.constant 0 : index
    %c0_24 = arith.constant 0 : index
    %46 = vector.load %arg10[%c0_23, %c0_24] : memref<1x128xf32, #tpu.memory_space<vmem>>, vector<1x128xf32>
    tpu.vector_store %arg10[%c0_23, %c0_24], %28 {strides = array<i32>} : memref<1x128xf32, #tpu.memory_space<vmem>>, vector<1x128xf32>,
    %c0_25 = arith.constant 0 : index
    %c0_26 = arith.constant 0 : index
    %47 = vector.load %arg11[%c0_25, %c0_26] : memref<1x128xf32, #tpu.memory_space<vmem>>, vector<1x128xf32>
    tpu.vector_store %arg11[%c0_25, %c0_26], %26 {strides = array<i32>} : memref<1x128xf32, #tpu.memory_space<vmem>>, vector<1x128xf32>,
    %c7_i32 = arith.constant 7 : i32
    %48 = arith.cmpi eq, %arg0, %c7_i32 : i32
    %49 = arith.extui %48 : i1 to i32
    %c0_i32_27 = arith.constant 0 : i32
    %50 = arith.cmpi ne, %49, %c0_i32_27 : i32
    scf.if %50 {
      %c0_28 = arith.constant 0 : index
      %c0_29 = arith.constant 0 : index
      %51 = vector.load %arg9[%c0_28, %c0_29] : memref<1x256xf32, #tpu.memory_space<vmem>>, vector<1x128xf32>
      tpu.vector_store %arg9[%c0_28, %c0_29], %28 {strides = array<i32>} : memref<1x256xf32, #tpu.memory_space<vmem>>, vector<1x128xf32>,
      %c0_30 = arith.constant 0 : index
      %c128 = arith.constant 128 : index
      %52 = vector.load %arg9[%c0_30, %c128] : memref<1x256xf32, #tpu.memory_space<vmem>>, vector<1x128xf32>
      tpu.vector_store %arg9[%c0_30, %c128], %26 {strides = array<i32>} : memref<1x256xf32, #tpu.memory_space<vmem>>, vector<1x128xf32>,
    } else {
    }
    return
  }
  func.func @transform_0(%arg0: i32, %arg1: memref<8xi32, #tpu.memory_space<smem>>) -> (i32, i32, i32) {
    %0 = arith.index_cast %arg0 : i32 to index
    %1 = memref.load %arg1[%0] : memref<8xi32, #tpu.memory_space<smem>>
    %c0_i32 = arith.constant 0 : i32
    %c0_i32_0 = arith.constant 0 : i32
    %c0_i32_1 = arith.constant 0 : i32
    return %1, %c0_i32, %c0_i32_0 : i32, i32, i32
  }
  func.func @transform_1(%arg0: i32, %arg1: memref<8xi32, #tpu.memory_space<smem>>) -> (i32, i32) {
    %c0_i32 = arith.constant 0 : i32
    %c0_i32_0 = arith.constant 0 : i32
    %c0_i32_1 = arith.constant 0 : i32
    return %c0_i32, %c0_i32_0 : i32, i32
  }
  func.func @transform_2(%arg0: i32, %arg1: memref<8xi32, #tpu.memory_space<smem>>) -> (i32, i32) {
    %c0_i32 = arith.constant 0 : i32
    %c0_i32_0 = arith.constant 0 : i32
    %c0_i32_1 = arith.constant 0 : i32
    return %c0_i32, %c0_i32_0 : i32, i32
  }
  func.func @transform_3(%arg0: i32, %arg1: memref<8xi32, #tpu.memory_space<smem>>) -> (i32, i32) {
    %c0_i32 = arith.constant 0 : i32
    %c0_i32_0 = arith.constant 0 : i32
    %c0_i32_1 = arith.constant 0 : i32
    return %c0_i32, %c0_i32_0 : i32, i32
  }
  func.func @transform_4(%arg0: i32, %arg1: memref<8xi32, #tpu.memory_space<smem>>) -> (i32, i32) {
    %c0_i32 = arith.constant 0 : i32
    %c0_i32_0 = arith.constant 0 : i32
    %c0_i32_1 = arith.constant 0 : i32
    return %c0_i32, %c0_i32_0 : i32, i32
  }
  func.func @transform_5(%arg0: i32, %arg1: memref<8xi32, #tpu.memory_space<smem>>) -> (i32, i32) {
    %c0_i32 = arith.constant 0 : i32
    %c0_i32_0 = arith.constant 0 : i32
    %c0_i32_1 = arith.constant 0 : i32
    return %c0_i32, %c0_i32_0 : i32, i32
  }
  func.func @transform_6(%arg0: i32, %arg1: memref<8xi32, #tpu.memory_space<smem>>) -> (i32, i32, i32) {
    %c0_i32 = arith.constant 0 : i32
    %c0_i32_0 = arith.constant 0 : i32
    %c0_i32_1 = arith.constant 0 : i32
    return %arg0, %c0_i32, %c0_i32_0 : i32, i32, i32
  }
  func.func @transform_7(%arg0: i32, %arg1: memref<8xi32, #tpu.memory_space<smem>>) -> (i32, i32) {
    %c0_i32 = arith.constant 0 : i32
    %c0_i32_0 = arith.constant 0 : i32
    %c0_i32_1 = arith.constant 0 : i32
    return %c0_i32, %c0_i32_0 : i32, i32
  }
}

</mosaic_0001>

<bundles_post_ra>
// kernel: decoder_lstm_decode.1
= control target key start
LH: loop header
LB: loop body
LE: loop exit
PB: predicated region body
PF: predicated region fallthrough
CT: control target
= control target key end

     0   :  { %s1531_s0 = inlined_call_operand.vmem [shape: s32[8], index: 0, kind: input, shape index: {}]   ;;  %s1532_s1 = inlined_call_operand.hbm [shape: f32[64,1,128], index: 1, kind: input, shape index: {}]   ;;  %s1533_s2 = inlined_call_operand.vmem [shape: f32[1,256], index: 2, kind: input, shape index: {}]   ;;  %s1534_s3 = inlined_call_operand.hbm [shape: f32[256,512], index: 3, kind: input, shape index: {}]   ;;  %s1535_s4 = inlined_call_operand.vmem [shape: f32[1,512], index: 4, kind: input, shape index: {}]   ;;  %s1536_s5 = inlined_call_operand.hbm [shape: f32[128,128], index: 5, kind: input, shape index: {}]   ;;  %s1537_s6 = inlined_call_operand.vmem [shape: f32[1,128], index: 6, kind: input, shape index: {}]   ;;  %s1538_s7 = inlined_call_operand.hbm [shape: f32[8,1,128], index: 7, kind: output, shape index: {0}]   ;;  %s1539_s8 = inlined_call_operand.vmem [shape: f32[1,256], index: 8, kind: output, shape index: {1}]  }
   0x1   :  { %1546 = sst [smem:[#allocation23_spill]] %s1534_s3  ;;  %s14_s29 = sshll.u32 %s1531_s0, 4  ;;  %s15_s29 = int_to_ptr.vmem [resolvable:$true] %s14_s29 }
   0x2   :  { %1547 = sst [smem:[#allocation24_spill]] %s1536_s5  ;;  %s1061_s30 = scalar_lea.vmem %s15_s29, 16 }
   0x3   :  { %p1062_p0 = scmp.ne.s32.totalorder %s15_s29, %s1061_s30  ;;  %p1066_p1 = scmp.lt.s32.totalorder %s15_s29, %s15_s29 }
   0x4   :  { %p1067_p2 = scmp.lt.s32.totalorder %s1061_s30, %s1061_s30 }
   0x6   :  { %p1068_p3 = por %p1067_p2, %p1066_p1 }
   0x8   :  { %p1069_p4 = pnand %p1068_p3, %p1062_p0 }
   0xa   :  { %1072 = shalt.err (!%p1069_p4)  }
   0xb   :  { %s1249_s9 = smov [#allocation5]  }
   0xc   :  { %17 = dma.vmem_to_smem %s15_s29, 16, %s1249_s9, [#allocation4] }
   0xd   :  { %1207 = dma.done.wait [#allocation4], 16 }
   0xe   :  { %1208 = vsyncadd [#allocation4], 4294967280 }
   0xf   :  { %19 = sfence }
  0x10   :  { %20 = vsyncpa [#allocation7], 0 }
  0x11   :  { %22 = vsyncpa [#allocation7 + $0x1], 0 }
  0x12   :  { %23 = vsyncpa [#allocation10], 0 }
  0x13   :  { %24 = vsyncpa [#allocation8], 0 }
  0x14   :  { %26 = vsyncpa [#allocation8 + $0x1], 0  ;;  %s1308_s10 = smov 0   ;;  %s1310_s0 = smov 0  }
  0x15   :  { %s1312_s11 = smov 0   ;;  %s1314_s12 = smov 0  }
  0x16   :  { %s1316_s13 = smov 0   ;;  %s1318_s14 = smov 0  }
  0x17   :  { %s1320_s15 = smov 0  }
  0x18 LB: > { %1548 = sst [smem:[#allocation19_spill]] %s1231_s11  ;;  %s1342_s16 = sadd.s32 4294967295, %s1247_s15   ;;  %s1247_s15 = sphi %s1320_s15, %s1576_s15   ;;  %s1243_s14 = sphi %s1318_s14, %s1575_s14   ;;  %s1239_s13 = sphi %s1316_s13, %s1574_s13   ;;  %s1235_s12 = sphi %s1314_s12, %s1573_s12   ;;  %s1231_s11 = sphi %s1312_s11, %s1569_s11   ;;  %s1227_s0 = sphi %s1310_s0, %s1572_s0   ;;  %s1223_s10 = sphi %s1308_s10, %s1571_s10  }
  0x19   : > { %s870_s17 = sadd.s32 4294967294, %s1247_s15   ;;  %s1346_s18 = sadd.s32 1, %s1247_s15  }
  0x1a   : > { %p54_p5 = scmp.ne.s32.totalorder %s1239_s13, %s1235_s12  ;;  %p1540_p6 = scmp.eq.s32.totalorder %s1342_s16, 0 }
  0x1b   : > { %s169_s19 = ssub.s32 %s1247_s15, %s1346_s18  ;;  %s172_s20 = sadd.s32 1, %s1231_s11 }
  0x1c   : > { %p170_p7 = scmp.eq.s32.totalorder %s169_s19, 0  ;;  %p1355_p8 = por %p1540_p6, %p54_p5 }
  0x1d   : > { %p182_p9 = scmp.ne.s32.totalorder %s1231_s11, %s1227_s0  ;;  %p183_p10 = scmp.eq.s32.totalorder %s1342_s16, 7 }
  0x1e   : > { %s1549_s21 = scalar_select %p1355_p8, 1, 0 }
  0x1f   : > { %s1362_s22 = scalar_select %p170_p7, %s1231_s11, %s172_s20  }
  0x20   : > { %p188_p11 = scmp.ne.s32.totalorder %s1227_s0, %s1223_s10  ;;  %p189_p12 = scmp.eq.s32.totalorder %s870_s17, 7 }
  0x21   : > { %1550 = sst [smem:[#allocation20_spill]] %s1362_s22  ;;  %p871_p13 = scmp.ge.s32.totalorder %s1247_s15, 1 }
  0x22   : > { %p1368_p0 = por %p183_p10, %p182_p9  ;;  %p217_p1 = scmp.lt.s32.totalorder %s1247_s15, 9 }
  0x23   : > { %p1373_p2 = por %p189_p12, %p188_p11  ;;  %s1250_s26 = smov [#allocation9]  }
  0x24   : > { %s1551_s23 = scalar_select %p1368_p0, 1, 0 }
  0x25   : > { %s1552_s24 = scalar_select %p1373_p2, 1, 0 }
  0x26   : > { %p1378_p4 = pnand %p871_p13, %p217_p1  ;;  %s232_s27 = sshll.u32 %s1250_s26, 4  ;;  %s233_s27 = int_to_ptr.vmem [resolvable:$true] %s232_s27 }
  0x27   : > { %1553 = sst [smem:[#allocation21_spill]] %s1552_s24  ;;  %s1251_s29 = smov [#allocation11]  }
  0x28   : > { %s1554_s25 = scalar_select %p1378_p4, 1, 0 }
  0x29   : > { %p953_p5 = pneg %p1378_p4  ;;  %s248_s30 = sshll.u32 %s1251_s29, 4  ;;  %s249_s30 = int_to_ptr.vmem [resolvable:$true] %s248_s30 }
  0x2a   : > { %s1084_s9 = scalar_lea.vmem %s233_s27, 16384  ;;  %p1092_p13 = scmp.lt.s32.totalorder %s233_s27, %s233_s27 }
  0x2b   : > { %p1386_p7 = pnand %p953_p5, %p1540_p6  ;;  %p1085_p10 = scmp.ne.s32.totalorder %s233_s27, %s1084_s9 }
  0x2c   : > { %p1093_p1 = scmp.lt.s32.totalorder %s1084_s9, %s1084_s9 }
  0x2d   : > { %p1075_p9 = pneg %p1386_p7 }
  0x2e   : > { %p1094_p3 = por %p1093_p1, %p1092_p13 }
  0x2f   : > { %p1087_p11 = pnand %p1085_p10, %p1075_p9 }
  0x31   : > { %p1088_p12 = pneg %p1087_p11 }
  0x33   : > { %p1095_p5 = pnand %p1094_p3, %p1088_p12 }
  0x35   : > { %1098 = shalt.err (!%p1095_p5)
}
  0x36   : > { %s1252_s12 = smov 512   ;;  %s1253_s17 = smov 32  }
  0x37   : > { %s1556_s3 = sld [smem:[#allocation23_spill]]  ;;  %s1110_s26 = scalar_lea.vmem %s249_s30, 2048 }
  0x38   : > { %p1111_p6 = scmp.ne.s32.totalorder %s249_s30, %s1110_s26  ;;  %p1118_p2 = scmp.lt.s32.totalorder %s249_s30, %s249_s30 }
  0x39   : > { %p1119_p0 = scmp.lt.s32.totalorder %s1110_s26, %s1110_s26 }
  0x3a   : > { %p1113_p10 = pnand %p1111_p6, %p1075_p9 }
  0x3b   : > { %p1120_p13 = por %p1119_p0, %p1118_p2 }
  0x3c   : > { %p1114_p11 = pneg %p1113_p10 }
  0x3d   : > { %956 = dma.hbm_to_vmem [thread:$0]  (!%p1386_p7), %s1556_s3, 16384, %s233_s27, [#allocation10], %s1252_s12, %s1252_s12, %s1253_s17  }
  0x3e   : > { %p1121_p3 = pnand %p1120_p13, %p1114_p11 }
  0x40   : > { %1124 = shalt.err (!%p1121_p3)
}
  0x41   : > { %s1254_s29 = smov 128   ;;  %s1255_s27 = smov 8  }
  0x42   : > { %s1557_s5 = sld [smem:[#allocation24_spill]]  ;;  %p48_p6 = scmp.ne.s32.totalorder %s1243_s14, %s1239_s13 }
  0x43   : > { %s36_s17 = sld [smem:[#allocation5 + %s1247_s15]]  ;;  %p49_p0 = scmp.eq.s32.totalorder %s1247_s15, 0 }
  0x44   : > { %s37_s19 = sld [smem:[#allocation5 + %s1346_s18]]  ;;  %s41_s20 = sadd.s32 1, %s1243_s14 }
  0x45   : > { %p50_p2 = por %p49_p0, %p48_p6  ;;  %p972_p9 = scmp.lt.s32.totalorder %s1247_s15, 8 }
  0x46   : > { %s265_s22 = sand.u32 1, %s1243_s14  }
  0x47   : > { %s943_s26 = scalar_select %p50_p2, [#allocation5], [#allocation13] }
  0x48   : > { %959 = dma.hbm_to_vmem [thread:$0]  (!%p1386_p7), %s1557_s5, 2048, %s249_s30, [#allocation10], %s1254_s29, %s1254_s29, %s1255_s27  }
  0x49   : > { %s944_s11 = scalar_select %p50_p2, %s1247_s15, 0 }
  0x4a   : > { %s38_s3 = ssub.s32 %s36_s17, %s37_s19  ;;  %s1578_s26 = smov (!%p972_p9, %s943_s26), [#allocation14] }
  0x4b   : > { %p39_p12 = scmp.eq.s32.totalorder %s38_s3, 0  ;;  %s1580_s11 = smov (!%p972_p9, %s944_s11), 0 }
  0x4c   : > { %p1420_p1 = pnand %p972_p9, %p50_p2  ;;  %s269_s30 = sld [smem:[%s1578_s26 + %s1580_s11]] }
  0x4d   : > { %s1418_s24 = scalar_select %p39_p12, %s1243_s14, %s41_s20  }
  0x4e   : > { %s268_s29 = scalar_lea.vmem [#allocation6], %s265_s22  ;;  %s266_s19 = scalar_lea.sflag [#allocation7], %s265_s22 }
  0x4f   : > { %1558 = sst [smem:[#allocation22_spill]] %s1418_s24  ;;  %s276_s27 = sshll.u32 %s268_s29, 4  ;;  %s1424_s27 = int_to_ptr.vmem [resolvable:$true] %s276_s27 }
  0x50   : > { %p1127_p5 = pneg %p1420_p1  ;;  %s1130_s11 = scalar_lea.hbm %s1532_s1, 1024 }
  0x52   : > { %s875_s9 = sshll.u32 %s269_s30, 4 }
  0x53   : > { %s274_s3 = scalar_lea.hbm %s1532_s1, %s875_s9 }
  0x54   : > { %s1125_s20 = scalar_lea.hbm %s274_s3, 16  ;;  %p1131_p13 = scmp.lt.s32.totalorder %s274_s3, %s1532_s1 }
  0x55   : > { %p1126_p7 = scmp.ne.s32.totalorder %s274_s3, %s1125_s20  ;;  %p1132_p3 = scmp.lt.s32.totalorder %s1130_s11, %s1125_s20 }
  0x57   : > { %p1128_p10 = pnand %p1127_p5, %p1126_p7  ;;  %p1133_p6 = por %p1132_p3, %p1131_p13 }
  0x59   : > { %p1129_p11 = pneg %p1128_p10 }
  0x5b   : > { %p1134_p0 = pnand %p1133_p6, %p1129_p11 }
  0x5d   : > { %1137 = shalt.err (!%p1134_p0)
}
  0x5e   : > { %s1138_s22 = scalar_lea.vmem %s1424_s27, 16  ;;  %s1256_s30 = smov [#allocation6]  }
  0x5f   : > { %p1139_p2 = scmp.ne.s32.totalorder %s1424_s27, %s1138_s22  ;;  %s1143_s9 = sshll.u32 %s1256_s30, 4  ;;  %s1144_s9 = int_to_ptr.vmem [resolvable:$false] %s1143_s9 }
  0x60   : > { %s1145_s5 = scalar_lea.vmem %s1144_s9, 32  ;;  %p1146_p7 = scmp.lt.s32.totalorder %s1424_s27, %s1144_s9 }
  0x61   : > { %p1141_p9 = pnand %p1139_p2, %p1127_p5  ;;  %p1147_p10 = scmp.lt.s32.totalorder %s1145_s5, %s1138_s22 }
  0x63   : > { %p1142_p12 = pneg %p1141_p9  ;;  %p1148_p8 = por %p1147_p10, %p1146_p7 }
  0x65   : > { %p1149_p4 = pnand %p1148_p8, %p1142_p12 }
  0x67   : > { %1152 = shalt.err (!%p1149_p4)
}
  0x68   : > { %965 = dma.hbm_to_vmem [thread:$0]  (!%p1420_p1), %s274_s3, 16, %s1424_s27, %s266_s19  }
  0x69   : > { %p1560_p11 = scmp.ne.s32.totalorder %s1554_s25, 0 }
  0x6a   : > { %s287_s24 = sand.u32 (!%p1560_p11), 1, %s1239_s13   ;;  %p1561_p5 = scmp.ne.s32.totalorder (!%p1560_p11), %s1549_s21, 0 }
  0x6b   : > { %285 = sbr.rel (%p1560_p11) target bundleno = 975 (0x3cf), region = 44  ;;  %s288_s12 = scalar_lea.sflag (!%p1560_p11), [#allocation7], %s287_s24 }
  0x6c   : > { %s1446_s17 = scalar_lea.vmem (!%p1560_p11), [#allocation6], %s287_s24 }
  0x70   : > { %1210 = dma.done.wait (%p1561_p5), %s288_s12, 16  }
  0x71   : > { %1212 = vsyncadd (%p1561_p5), %s288_s12, 4294967280  ;;  %p1562_p8 = scmp.eq.s32.totalorder %s1342_s16, 0 }
  0x73   : > { %1214 = dma.done.wait (%p1562_p8), [#allocation10], 18432   ;;  %p1563_p4 = pmov %p1562_p8 }
  0x74   : > { %s323_s25 = sand.u32 1, %s1227_s0   ;;  %p1564_p1 = scmp.ne.s32.totalorder %s1342_s16, 0 }
  0x75   : > { %1216 = vsyncadd (%p1563_p4), [#allocation10], 4294948864  ;;  %s1459_s28 = scalar_lea.vmem [#allocation12], %s323_s25 }
  0x76   : > { %331 = sbr.rel (%p1564_p1) target bundleno = 125 (0x7d), region = 60 }
  0x7b   : > { %v332_v0 = vld [vmem:[%s1533_s2] sm:$0x1]  ;;  %v334_v1 = vld [vmem:[%s1533_s2 + $0x1] sm:$0x1] }
  0x7c   : > { %333 = vst [vmem:[#allocation2] sm:$0x1] %v332_v0  ;;  %335 = vst [vmem:[#allocation3] sm:$0x1] %v334_v1 }
  0x7d PF: > { %v401_v2 = vld [vmem:[#allocation9 + $0x1e8] sm:$0xff]  ;;  %v400_v3 = vld [vmem:[#allocation9 + $0x1e0] sm:$0xff]  ;;  %v403_v10 = vld [vmem:[#allocation9 + $0x1f8] sm:$0xff]  ;;  %vm1258_vm0 = vmmov 0   ;;  %vm743_vm1 = vcmask 1040384   ;;  %p883_p13 = scmp.ne.s32.totalorder %s1342_s16, 7 }
  0x7e   : > { %v397_v4 = vld [vmem:[#allocation9 + $0x1c8] sm:$0xff]  ;;  %490 = vmatprep.subr.mxu0 %v401_v2  ;;  %v396_v5 = vld [vmem:[#allocation9 + $0x1c0] sm:$0xff]  ;;  %561 = vmatprep.subr.mxu1 %v403_v10  ;;  %v402_v12 = vld [vmem:[#allocation9 + $0x1f0] sm:$0xff] }
  0x7f   : > { %491 = vmatpush1.msra.mxu0 %v400_v3  ;;  %v393_v6 = vld [vmem:[#allocation9 + $0x1a8] sm:$0xff]  ;;  %v392_v7 = vld [vmem:[#allocation9 + $0x1a0] sm:$0xff]  ;;  %562 = vmatpush1.msra.mxu1 %v402_v12  ;;  %v399_v14 = vld [vmem:[#allocation9 + $0x1d8] sm:$0xff] }
  0x80   : > { %492 = vmatprep.subr.mxu0 %v397_v4  ;;  %v389_v8 = vld [vmem:[#allocation9 + $0x188] sm:$0xff]  ;;  %v388_v9 = vld [vmem:[#allocation9 + $0x180] sm:$0xff]  ;;  %v398_v15 = vld [vmem:[#allocation9 + $0x1d0] sm:$0xff]  ;;  %563 = vmatprep.subr.mxu1 %v399_v14 }
  0x81   : > { %493 = vmatpush1.msra.mxu0 %v396_v5  ;;  %v385_v11 = vld [vmem:[#allocation9 + $0x168] sm:$0xff]  ;;  %v384_v13 = vld [vmem:[#allocation9 + $0x160] sm:$0xff]  ;;  %v395_v17 = vld [vmem:[#allocation9 + $0x1b8] sm:$0xff]  ;;  %564 = vmatpush1.msra.mxu1 %v398_v15 }
  0x82   : > { %494 = vmatprep.subr.mxu0 %v393_v6  ;;  %v381_v16 = vld [vmem:[#allocation9 + $0x148] sm:$0xff]  ;;  %v380_v18 = vld [vmem:[#allocation9 + $0x140] sm:$0xff]  ;;  %v394_v19 = vld [vmem:[#allocation9 + $0x1b0] sm:$0xff]  ;;  %565 = vmatprep.subr.mxu1 %v395_v17 }
  0x83   : > { %495 = vmatpush1.msra.mxu0 %v392_v7  ;;  %v391_v20 = vld [vmem:[#allocation9 + $0x198] sm:$0xff]  ;;  %v377_v21 = vld [vmem:[#allocation9 + $0x128] sm:$0xff]  ;;  %v390_v22 = vld [vmem:[#allocation9 + $0x190] sm:$0xff]  ;;  %566 = vmatpush1.msra.mxu1 %v394_v19 }
  0x84   : > { %496 = vmatprep.subr.mxu0 %v389_v8  ;;  %v376_v23 = vld [vmem:[#allocation9 + $0x120] sm:$0xff]  ;;  %v387_v24 = vld [vmem:[#allocation9 + $0x178] sm:$0xff]  ;;  %v373_v25 = vld [vmem:[#allocation9 + $0x108] sm:$0xff]  ;;  %567 = vmatprep.subr.mxu1 %v391_v20 }
  0x85   : > { %497 = vmatpush1.msra.mxu0 %v388_v9  ;;  %v386_v26 = vld [vmem:[#allocation9 + $0x170] sm:$0xff]  ;;  %v372_v27 = vld [vmem:[#allocation9 + $0x100] sm:$0xff]  ;;  %568 = vmatpush1.msra.mxu1 %v390_v22  ;;  %v383_v28 = vld [vmem:[#allocation9 + $0x158] sm:$0xff] }
  0x86   : > { %498 = vmatprep.subr.mxu0 %v385_v11  ;;  %v369_v29 = vld [vmem:[#allocation9 + $0xe8] sm:$0xff]  ;;  %569 = vmatprep.subr.mxu1 %v387_v24  ;;  %v382_v30 = vld [vmem:[#allocation9 + $0x150] sm:$0xff]  ;;  %v368_v31 = vld [vmem:[#allocation9 + $0xe0] sm:$0xff] }
  0x87   : > { %499 = vmatpush1.msra.mxu0 %v384_v13  ;;  %570 = vmatpush1.msra.mxu1 %v386_v26  ;;  %v379_v32 = vld [vmem:[#allocation9 + $0x138] sm:$0xff]  ;;  %v365_v33 = vld [vmem:[#allocation9 + $0xc8] sm:$0xff]  ;;  %v378_v34 = vld [vmem:[#allocation9 + $0x130] sm:$0xff] }
  0x88   : > { %500 = vmatprep.subr.mxu0 %v381_v16  ;;  %571 = vmatprep.subr.mxu1 %v383_v28  ;;  %v364_v35 = vld [vmem:[#allocation9 + $0xc0] sm:$0xff]  ;;  %v375_v36 = vld [vmem:[#allocation9 + $0x118] sm:$0xff]  ;;  %v361_v37 = vld [vmem:[#allocation9 + $0xa8] sm:$0xff] }
  0x89   : > { %501 = vmatpush1.msra.mxu0 %v380_v18  ;;  %572 = vmatpush1.msra.mxu1 %v382_v30  ;;  %v374_v38 = vld [vmem:[#allocation9 + $0x110] sm:$0xff]  ;;  %v360_v39 = vld [vmem:[#allocation9 + $0xa0] sm:$0xff]  ;;  %v371_v40 = vld [vmem:[#allocation9 + $0xf8] sm:$0xff] }
  0x8a   : > { %502 = vmatprep.subr.mxu0 %v377_v21  ;;  %573 = vmatprep.subr.mxu1 %v379_v32  ;;  %v357_v41 = vld [vmem:[#allocation9 + $0x88] sm:$0xff]  ;;  %v370_v42 = vld [vmem:[#allocation9 + $0xf0] sm:$0xff]  ;;  %v356_v43 = vld [vmem:[#allocation9 + $0x80] sm:$0xff] }
  0x8b   : > { %503 = vmatpush1.msra.mxu0 %v376_v23  ;;  %574 = vmatpush1.msra.mxu1 %v378_v34  ;;  %v367_v44 = vld [vmem:[#allocation9 + $0xd8] sm:$0xff]  ;;  %v353_v45 = vld [vmem:[#allocation9 + $0x68] sm:$0xff]  ;;  %v366_v46 = vld [vmem:[#allocation9 + $0xd0] sm:$0xff] }
  0x8c   : > { %504 = vmatprep.subr.mxu0 %v373_v25  ;;  %575 = vmatprep.subr.mxu1 %v375_v36  ;;  %v352_v47 = vld [vmem:[#allocation9 + $0x60] sm:$0xff]  ;;  %v363_v48 = vld [vmem:[#allocation9 + $0xb8] sm:$0xff]  ;;  %v349_v49 = vld [vmem:[#allocation9 + $0x48] sm:$0xff] }
  0x8d   : > { %505 = vmatpush1.msra.mxu0 %v372_v27  ;;  %576 = vmatpush1.msra.mxu1 %v374_v38  ;;  %v362_v50 = vld [vmem:[#allocation9 + $0xb0] sm:$0xff]  ;;  %v348_v51 = vld [vmem:[#allocation9 + $0x40] sm:$0xff]  ;;  %v359_v52 = vld [vmem:[#allocation9 + $0x98] sm:$0xff] }
  0x8e   : > { %506 = vmatprep.subr.mxu0 %v369_v29  ;;  %577 = vmatprep.subr.mxu1 %v371_v40  ;;  %v345_v53 = vld [vmem:[#allocation9 + $0x28] sm:$0xff]  ;;  %v358_v54 = vld [vmem:[#allocation9 + $0x90] sm:$0xff]  ;;  %v344_v55 = vld [vmem:[#allocation9 + $0x20] sm:$0xff] }
  0x8f   : > { %507 = vmatpush1.msra.mxu0 %v368_v31  ;;  %578 = vmatpush1.msra.mxu1 %v370_v42  ;;  %v355_v56 = vld [vmem:[#allocation9 + $0x78] sm:$0xff]  ;;  %v341_v57 = vld [vmem:[#allocation9 + $0x8] sm:$0xff]  ;;  %v354_v58 = vld [vmem:[#allocation9 + $0x70] sm:$0xff] }
  0x90   : > { %508 = vmatprep.subr.mxu0 %v365_v33  ;;  %579 = vmatprep.subr.mxu1 %v367_v44  ;;  %v340_v59 = vld [vmem:[#allocation9] sm:$0xff]  ;;  %v351_v60 = vld [vmem:[#allocation9 + $0x58] sm:$0xff]  ;;  %v465_v61 = vld [vmem:[#allocation9 + $0x3e8] sm:$0xff] }
  0x91   : > { %509 = vmatpush1.msra.mxu0 %v364_v35  ;;  %580 = vmatpush1.msra.mxu1 %v366_v46  ;;  %v350_v62 = vld [vmem:[#allocation9 + $0x50] sm:$0xff]  ;;  %v464_v63 = vld [vmem:[#allocation9 + $0x3e0] sm:$0xff]  ;;  %v347_v0 = vld [vmem:[#allocation9 + $0x38] sm:$0xff] }
  0x92   : > { %510 = vmatprep.subr.mxu0 %v361_v37  ;;  %581 = vmatprep.subr.mxu1 %v363_v48  ;;  %v461_v1 = vld [vmem:[#allocation9 + $0x3c8] sm:$0xff]  ;;  %v346_v2 = vld [vmem:[#allocation9 + $0x30] sm:$0xff]  ;;  %v460_v3 = vld [vmem:[#allocation9 + $0x3c0] sm:$0xff] }
  0x93   : > { %511 = vmatpush1.msra.mxu0 %v360_v39  ;;  %582 = vmatpush1.msra.mxu1 %v362_v50  ;;  %v343_v4 = vld [vmem:[#allocation9 + $0x18] sm:$0xff]  ;;  %v457_v5 = vld [vmem:[#allocation9 + $0x3a8] sm:$0xff]  ;;  %v342_v6 = vld [vmem:[#allocation9 + $0x10] sm:$0xff] }
  0x94   : > { %512 = vmatprep.subr.mxu0 %v357_v41  ;;  %583 = vmatprep.subr.mxu1 %v359_v52  ;;  %v456_v7 = vld [vmem:[#allocation9 + $0x3a0] sm:$0xff]  ;;  %v467_v8 = vld [vmem:[#allocation9 + $0x3f8] sm:$0xff]  ;;  %v453_v9 = vld [vmem:[#allocation9 + $0x388] sm:$0xff] }
  0x95   : > { %513 = vmatpush1.msra.mxu0 %v356_v43  ;;  %584 = vmatpush1.msra.mxu1 %v358_v54  ;;  %v466_v10 = vld [vmem:[#allocation9 + $0x3f0] sm:$0xff]  ;;  %v452_v11 = vld [vmem:[#allocation9 + $0x380] sm:$0xff]  ;;  %v463_v12 = vld [vmem:[#allocation9 + $0x3d8] sm:$0xff] }
  0x96   : > { %514 = vmatprep.subr.mxu0 %v353_v45  ;;  %585 = vmatprep.subr.mxu1 %v355_v56  ;;  %v449_v13 = vld [vmem:[#allocation9 + $0x368] sm:$0xff]  ;;  %v462_v14 = vld [vmem:[#allocation9 + $0x3d0] sm:$0xff]  ;;  %v448_v15 = vld [vmem:[#allocation9 + $0x360] sm:$0xff] }
  0x97   : > { %515 = vmatpush1.msra.mxu0 %v352_v47  ;;  %586 = vmatpush1.msra.mxu1 %v354_v58  ;;  %v459_v16 = vld [vmem:[#allocation9 + $0x3b8] sm:$0xff]  ;;  %v445_v17 = vld [vmem:[#allocation9 + $0x348] sm:$0xff]  ;;  %v458_v18 = vld [vmem:[#allocation9 + $0x3b0] sm:$0xff] }
  0x98   : > { %516 = vmatprep.subr.mxu0 %v349_v49  ;;  %587 = vmatprep.subr.mxu1 %v351_v60  ;;  %v444_v19 = vld [vmem:[#allocation9 + $0x340] sm:$0xff]  ;;  %v455_v20 = vld [vmem:[#allocation9 + $0x398] sm:$0xff]  ;;  %v441_v21 = vld [vmem:[#allocation9 + $0x328] sm:$0xff] }
  0x99   : > { %517 = vmatpush1.msra.mxu0 %v348_v51  ;;  %588 = vmatpush1.msra.mxu1 %v350_v62  ;;  %v454_v22 = vld [vmem:[#allocation9 + $0x390] sm:$0xff]  ;;  %v440_v23 = vld [vmem:[#allocation9 + $0x320] sm:$0xff]  ;;  %v451_v24 = vld [vmem:[#allocation9 + $0x378] sm:$0xff] }
  0x9a   : > { %518 = vmatprep.subr.mxu0 %v345_v53  ;;  %589 = vmatprep.subr.mxu1 %v347_v0  ;;  %v437_v25 = vld [vmem:[#allocation9 + $0x308] sm:$0xff]  ;;  %v450_v26 = vld [vmem:[#allocation9 + $0x370] sm:$0xff]  ;;  %v436_v27 = vld [vmem:[#allocation9 + $0x300] sm:$0xff] }
  0x9b   : > { %519 = vmatpush1.msra.mxu0 %v344_v55  ;;  %590 = vmatpush1.msra.mxu1 %v346_v2  ;;  %v447_v28 = vld [vmem:[#allocation9 + $0x358] sm:$0xff]  ;;  %v433_v29 = vld [vmem:[#allocation9 + $0x2e8] sm:$0xff]  ;;  %v446_v30 = vld [vmem:[#allocation9 + $0x350] sm:$0xff] }
  0x9c   : > { %520 = vmatprep.subr.mxu0 %v341_v57  ;;  %591 = vmatprep.subr.mxu1 %v343_v4  ;;  %v432_v31 = vld [vmem:[#allocation9 + $0x2e0] sm:$0xff]  ;;  %v443_v32 = vld [vmem:[#allocation9 + $0x338] sm:$0xff]  ;;  %v429_v33 = vld [vmem:[#allocation9 + $0x2c8] sm:$0xff] }
  0x9d   : > { %521 = vmatpush1.msra.mxu0 %v340_v59  ;;  %592 = vmatpush1.msra.mxu1 %v342_v6  ;;  %v442_v34 = vld [vmem:[#allocation9 + $0x330] sm:$0xff]  ;;  %v428_v35 = vld [vmem:[#allocation9 + $0x2c0] sm:$0xff]  ;;  %v439_v36 = vld [vmem:[#allocation9 + $0x318] sm:$0xff] }
  0x9e   : > { %522 = vmatprep.subr.mxu0 %v465_v61  ;;  %593 = vmatprep.subr.mxu1 %v467_v8  ;;  %v425_v37 = vld [vmem:[#allocation9 + $0x2a8] sm:$0xff]  ;;  %v338_v38 = vld [vmem:[#allocation2] sm:$0x1]  ;;  %v424_v39 = vld [vmem:[#allocation9 + $0x2a0] sm:$0xff] }
  0x9f   : > { %523 = vmatpush2.msra.mxu0 %v464_v63  ;;  %594 = vmatpush2.msra.mxu1 %v466_v10  ;;  %v438_v40 = vld [vmem:[#allocation9 + $0x310] sm:$0xff]  ;;  %v421_v41 = vld [vmem:[#allocation9 + $0x288] sm:$0xff]  ;;  %v435_v42 = vld [vmem:[#allocation9 + $0x2f8] sm:$0xff] }
  0xa0   : > { %524 = vmatprep.subr.mxu0 %v461_v1  ;;  %595 = vmatprep.subr.mxu1 %v463_v12  ;;  %v420_v43 = vld [vmem:[#allocation9 + $0x280] sm:$0xff]  ;;  %v434_v44 = vld [vmem:[#allocation9 + $0x2f0] sm:$0xff]  ;;  %v417_v45 = vld [vmem:[#allocation9 + $0x268] sm:$0xff] }
  0xa1   : > { %525 = vmatpush2.msra.mxu0 %v460_v3  ;;  %596 = vmatpush2.msra.mxu1 %v462_v14  ;;  %v431_v46 = vld [vmem:[#allocation9 + $0x2d8] sm:$0xff]  ;;  %v416_v47 = vld [vmem:[#allocation9 + $0x260] sm:$0xff]  ;;  %v430_v48 = vld [vmem:[#allocation9 + $0x2d0] sm:$0xff] }
  0xa2   : > { %526 = vmatprep.subr.mxu0 %v457_v5  ;;  %597 = vmatprep.subr.mxu1 %v459_v16  ;;  %v413_v49 = vld [vmem:[#allocation9 + $0x248] sm:$0xff]  ;;  %v427_v50 = vld [vmem:[#allocation9 + $0x2b8] sm:$0xff]  ;;  %v412_v51 = vld [vmem:[#allocation9 + $0x240] sm:$0xff]  ;;  %v1257_v5 = vmov 0.0  }
  0xa3   : > { %527 = vmatpush2.msra.mxu0 %v456_v7  ;;  %598 = vmatpush2.msra.mxu1 %v458_v18  ;;  %v426_v52 = vld [vmem:[#allocation9 + $0x2b0] sm:$0xff]  ;;  %v409_v53 = vld [vmem:[#allocation9 + $0x228] sm:$0xff]  ;;  %v336_v54 = vld [vmem:[%s1446_s17] sm:$0x1] }
  0xa4   : > { %528 = vmatprep.subr.mxu0 %v453_v9  ;;  %599 = vmatprep.subr.mxu1 %v455_v20  ;;  %v423_v55 = vld [vmem:[#allocation9 + $0x298] sm:$0xff]  ;;  %v408_v56 = vld [vmem:[#allocation9 + $0x220] sm:$0xff]  ;;  %v422_v57 = vld [vmem:[#allocation9 + $0x290] sm:$0xff]  ;;  %v337_v61 = vmax.f32 %v336_v54, 0.0 }
  0xa5   : > { %529 = vmatpush2.msra.mxu0 %v452_v11  ;;  %600 = vmatpush2.msra.mxu1 %v454_v22  ;;  %v405_v58 = vld [vmem:[#allocation9 + $0x208] sm:$0xff]  ;;  %v419_v59 = vld [vmem:[#allocation9 + $0x278] sm:$0xff]  ;;  %v404_v60 = vld [vmem:[#allocation9 + $0x200] sm:$0xff]  ;;  %v470_v22 = vlaneseq }
  0xa6   : > { %530 = vmatprep.subr.mxu0 %v449_v13  ;;  %601 = vmatprep.subr.mxu1 %v451_v24  ;;  %v418_v62 = vld [vmem:[#allocation9 + $0x270] sm:$0xff]  ;;  %v415_v63 = vld [vmem:[#allocation9 + $0x258] sm:$0xff]  ;;  %v669_v8 = vld [vmem:[#allocation11 + $0x68] sm:$0xff] }
  0xa7   : > { %531 = vmatpush2.msra.mxu0 %v448_v15  ;;  %602 = vmatpush2.msra.mxu1 %v450_v26  ;;  %v414_v0 = vld [vmem:[#allocation9 + $0x250] sm:$0xff]  ;;  %v411_v1 = vld [vmem:[#allocation9 + $0x238] sm:$0xff]  ;;  %v668_v9 = vld [vmem:[#allocation11 + $0x60] sm:$0xff] }
  0xa8   : > { %532 = vmatprep.subr.mxu0 %v445_v17  ;;  %603 = vmatprep.subr.mxu1 %v447_v28  ;;  %v410_v2 = vld [vmem:[#allocation9 + $0x230] sm:$0xff]  ;;  %v407_v3 = vld [vmem:[#allocation9 + $0x218] sm:$0xff]  ;;  %v665_v12 = vld [vmem:[#allocation11 + $0x48] sm:$0xff] }
  0xa9   : > { %533 = vmatpush2.msra.mxu0 %v444_v19  ;;  %604 = vmatpush2.msra.mxu1 %v446_v30  ;;  %v406_v4 = vld [vmem:[#allocation9 + $0x210] sm:$0xff]  ;;  %v671_v6 = vld [vmem:[#allocation11 + $0x78] sm:$0xff]  ;;  %v664_v13 = vld [vmem:[#allocation11 + $0x40] sm:$0xff] }
  0xaa   : > { %534 = vmatprep.subr.mxu0 %v441_v21  ;;  %605 = vmatprep.subr.mxu1 %v443_v32  ;;  %v670_v7 = vld [vmem:[#allocation11 + $0x70] sm:$0xff]  ;;  %v667_v10 = vld [vmem:[#allocation11 + $0x58] sm:$0xff]  ;;  %v661_v16 = vld [vmem:[#allocation11 + $0x28] sm:$0xff] }
  0xab   : > { %535 = vmatpush2.msra.mxu0 %v440_v23  ;;  %606 = vmatpush2.msra.mxu1 %v442_v34  ;;  %v666_v11 = vld [vmem:[#allocation11 + $0x50] sm:$0xff]  ;;  %v663_v14 = vld [vmem:[#allocation11 + $0x38] sm:$0xff]  ;;  %v660_v17 = vld [vmem:[#allocation11 + $0x20] sm:$0xff]  ;;  %v471_v23 = vshrl.u32 %v470_v22, 7 }
  0xac   : > { %536 = vmatprep.subr.mxu0 %v437_v25  ;;  %607 = vmatprep.subr.mxu1 %v439_v36  ;;  %v662_v15 = vld [vmem:[#allocation11 + $0x30] sm:$0xff]  ;;  %v659_v18 = vld [vmem:[#allocation11 + $0x18] sm:$0xff]  ;;  %v657_v20 = vld [vmem:[#allocation11 + $0x8] sm:$0xff] }
  0xad   : > { %537 = vmatpush2.msra.mxu0 %v436_v27  ;;  %554 = vmatprep.mubr.f32.mxu0 %v338_v38  ;;  %v658_v19 = vld [vmem:[#allocation11 + $0x10] sm:$0xff]  ;;  %v656_v21 = vld [vmem:[#allocation11] sm:$0xff]  ;;  %v472_v24 = vsub.s32 0, %v471_v23  ;;  %v468_v25 = vld [vmem:[%s1535_s4] sm:$0xf]  ;;  %v476_v26 = vsub.s32 1, %v471_v23 }
  0xae   : > { %538 = vmatprep.subr.mxu0 %v433_v29  ;;  %608 = vmatpush2.msra.mxu1 %v438_v40  ;;  %v484_v34 = vsub.s32 3, %v471_v23 }
  0xaf   : > { %539 = vmatpush2.msra.mxu0 %v432_v31  ;;  %609 = vmatprep.subr.mxu1 %v435_v42  ;;  %v473_v27 = vrot.slane %v468_v25, %v472_v24  ;;  %v477_v28 = vrot.slane %v468_v25, %v476_v26 }
  0xb0   : > { %540 = vmatprep.subr.mxu0 %v429_v33  ;;  %610 = vmatpush2.msra.mxu1 %v434_v44 }
  0xb1   : > { %541 = vmatpush2.msra.mxu0 %v428_v35  ;;  %611 = vmatprep.subr.mxu1 %v431_v46 }
  0xb2   : > { %542 = vmatprep.subr.mxu0 %v425_v37  ;;  %612 = vmatpush2.msra.mxu1 %v430_v48  ;;  %v480_v37 = vsub.s32 2, %v471_v23 }
  0xb3   : > { %543 = vmatpush2.msra.mxu0 %v424_v39  ;;  %613 = vmatprep.subr.mxu1 %v427_v50 }
  0xb4   : > { %544 = vmatprep.subr.mxu0 %v421_v41  ;;  %614 = vmatpush2.msra.mxu1 %v426_v52  ;;  %v481_v40 = vrot.slane %v468_v25, %v480_v37 }
  0xb5   : > { %545 = vmatpush2.msra.mxu0 %v420_v43  ;;  %615 = vmatprep.subr.mxu1 %v423_v55 }
  0xb6   : > { %546 = vmatprep.subr.mxu0 %v417_v45  ;;  %616 = vmatpush2.msra.mxu1 %v422_v57 }
  0xb7   : > { %547 = vmatpush2.msra.mxu0 %v416_v47  ;;  %617 = vmatprep.subr.mxu1 %v419_v59 }
  0xb8   : > { %548 = vmatprep.subr.mxu0 %v413_v49  ;;  %618 = vmatpush2.msra.mxu1 %v418_v62 }
  0xb9   : > { %549 = vmatpush2.msra.mxu0 %v412_v51  ;;  %619 = vmatprep.subr.mxu1 %v415_v63  ;;  %v339_v51 = vld [vmem:[#allocation3] sm:$0x1] }
  0xba   : > { %550 = vmatprep.subr.mxu0 %v409_v53  ;;  %620 = vmatpush2.msra.mxu1 %v414_v0 }
  0xbb   : > { %551 = vmatpush2.msra.mxu0 %v408_v56  ;;  %625 = vmatprep.mubr.f32.mxu1 %v338_v38  ;;  %v485_v38 = vrot.slane %v468_v25, %v484_v34 }
  0xbc   : > { %552 = vmatprep.subr.mxu0 %v405_v58  ;;  %621 = vmatprep.subr.mxu1 %v411_v1 }
  0xbd   : > { %553 = vmatpush2.msra.mxu0 %v404_v60  ;;  %622 = vmatpush2.msra.mxu1 %v410_v2  ;;  %v672_v60 = vld [vmem:[%s1537_s6] sm:$0x1] }
  0xbe   : > { %555 = vmatmul.mubr.f32.vlgmr.msra.gmra.mxu0 %v337_v61  ;;  %623 = vmatprep.subr.mxu1 %v407_v3 }
  0xbf   : > { %624 = vmatpush2.msra.mxu1 %v406_v4  ;;  %904 = vmatprep.subr.mxu0 %v1257_v5 }
  0xc0   : > { %626 = vmatmul.mubr.f32.vlgmr.msra.gmra.mxu1 %v337_v61  ;;  %905 = vmatpush3.msra.mxu0 %v671_v6 }
  0xc1   : > { %906 = vmatprep.subr.mxu0 %v1257_v5  ;;  %936 = vmatprep.mubr.msk.f32.mxu0 %vm1258_vm0, %v1257_v5 }
  0xc2   : > { %907 = vmatpush3.msra.mxu0 %v670_v7 }
  0xc3   : > { %908 = vmatprep.subr.mxu0 %v1257_v5 }
  0xc4   : > { %909 = vmatpush3.msra.mxu0 %v669_v8 }
  0xc5   : > { %910 = vmatprep.subr.mxu0 %v1257_v5 }
  0xc6   : > { %911 = vmatpush3.msra.mxu0 %v668_v9 }
  0xc7   : > { %912 = vmatprep.subr.mxu0 %v1257_v5 }
  0xc8   : > { %913 = vmatpush3.msra.mxu0 %v667_v10 }
  0xc9   : > { %914 = vmatprep.subr.mxu0 %v1257_v5 }
  0xca   : > { %915 = vmatpush3.msra.mxu0 %v666_v11 }
  0xcb   : > { %916 = vmatprep.subr.mxu0 %v1257_v5 }
  0xcc   : > { %917 = vmatpush3.msra.mxu0 %v665_v12 }
  0xcd   : > { %918 = vmatprep.subr.mxu0 %v1257_v5 }
  0xce   : > { %919 = vmatpush3.msra.mxu0 %v664_v13 }
  0xcf   : > { %920 = vmatprep.subr.mxu0 %v1257_v5 }
  0xd0   : > { %921 = vmatpush3.msra.mxu0 %v663_v14 }
  0xd1   : > { %922 = vmatprep.subr.mxu0 %v1257_v5 }
  0xd2   : > { %923 = vmatpush3.msra.mxu0 %v662_v15 }
  0xd3   : > { %924 = vmatprep.subr.mxu0 %v1257_v5 }
  0xd4   : > { %925 = vmatpush3.msra.mxu0 %v661_v16 }
  0xd5   : > { %926 = vmatprep.subr.mxu0 %v1257_v5 }
  0xd6   : > { %927 = vmatpush3.msra.mxu0 %v660_v17 }
  0xd7   : > { %928 = vmatprep.subr.mxu0 %v1257_v5 }
  0xd8   : > { %929 = vmatpush3.msra.mxu0 %v659_v18 }
  0xd9   : > { %930 = vmatprep.subr.mxu0 %v1257_v5 }
  0xda   : > { %931 = vmatpush3.msra.mxu0 %v658_v19 }
  0xdb   : > { %932 = vmatprep.subr.mxu0 %v1257_v5 }
  0xdc   : > { %933 = vmatpush3.msra.mxu0 %v657_v20 }
  0xdd   : > { %934 = vmatprep.subr.mxu0 %v1257_v5 }
  0xde   : > { %935 = vmatpush3.msra.mxu0 %v656_v21 }
 0x17e   : > { %v556_v29 = vpop.f32.mrf.mxu0 }
 0x17f   : > { %v557_v30 = vadd.f32 %v556_v29, %v473_v27 }
 0x180   : > { %v558_v31 = vpop.f32.mrf.mxu0  ;;  %v627_v36 = vpop.f32.mrf.mxu1 }
 0x181   : > { %v880_v32 = vmul.f32 -1.442695, %v557_v30  ;;  %v559_v33 = vadd.f32 %v558_v31, %v477_v28  ;;  %v628_v42 = vadd.f32 %v627_v36, %v481_v40 }
 0x182   : > { %v629_v39 = vpop.f32.mrf.mxu1 }
 0x183   : > { %1041 = vpow2.f32 %v880_v32  ;;  %v881_v35 = vmul.f32 -1.442695, %v559_v33  ;;  %v630_v41 = vadd.f32 %v629_v39, %v485_v38 }
 0x185   : > { %1043 = vpow2.f32 %v881_v35  ;;  %v882_v43 = vmul.f32 -1.442695, %v630_v41 }
 0x186   : > { %1045 = vtanh.f32 %v628_v42 }
 0x187   : > { %1047 = vpow2.f32 %v882_v43 }
 0x190   : > { %v1042_v44 = vpop.eup %1041 }
 0x191   : > { %v641_v45 = vadd.f32 1.0, %v1042_v44 }
 0x192   : > { %v1044_v46 = vpop.eup %1043 }
 0x193   : > { %1049 = vrcp.f32 %v641_v45  ;;  %v642_v47 = vadd.f32 1.0, %v1044_v46  ;;  %v1046_v48 = vpop.eup %1045 }
 0x194   : > { %v1048_v49 = vpop.eup %1047 }
 0x195   : > { %1051 = vrcp.f32 %v642_v47  ;;  %v643_v53 = vadd.f32 1.0, %v1048_v49 }
 0x197   : > { %1053 = vrcp.f32 %v643_v53 }
 0x1a0   : > { %v1050_v50 = vpop.eup %1049 }
 0x1a1   : > { %v652_v55 = vmul.f32 %v1050_v50, %v1046_v48 }
 0x1a2   : > { %v1052_v52 = vpop.eup %1051 }
 0x1a3   : > { %v651_v54 = vmul.f32 %v1052_v52, %v339_v51 }
 0x1a4   : > { %v1054_v57 = vpop.eup %1053 }
 0x1a5   : > { %v653_v56 = vadd.f32 %v652_v55, %v651_v54 }
 0x1a7   : > { %1055 = vtanh.f32 %v653_v56  ;;  %758 = vst [vmem:[#allocation3] sm:$0x1] %v653_v56 }
 0x1b4   : > { %v1056_v58 = vpop.eup %1055 }
 0x1b5   : > { %v655_v59 = vmul.f32 %v1056_v58, %v1054_v57 }
 0x1b7   : > { %937 = vmatmul.mubr.f32.vlgmr.msra.gmra.mxu0 %v655_v59  ;;  %757 = vst [vmem:[#allocation2] sm:$0x1] %v655_v59 }
 0x277   : > { %v739_v61 = vpop.f32.mrf.mxu0 }
 0x278   : > { %v740_v62 = vadd.f32 %v739_v61, %v672_v60 }
 0x279   : > { %v938_v63 = vpop.f32.mrf.mxu0 }
 0x27a   : > { %v744_v0 = vsel %vm743_vm1, %v740_v62, -inf }
 0x27b   : > { %745 = vmax.xlane.f32.xlu0 %v744_v0 }
 0x304   : > { %v746_v1 = vpop.xlane.xlu0 %745 }
 0x305   : > { %v747_v2 = vsub.f32 %v740_v62, %v746_v1 }
 0x307   : > { %v748_v3 = vmul.f32 1.442695, %v747_v2 }
 0x309   : > { %1057 = vpow2.f32 %v748_v3 }
 0x316   : > { %v1058_v4 = vpop.eup %1057 }
 0x317   : > { %v750_v5 = vsel %vm743_vm1, %v1058_v4, 0.0 }
 0x318   : > { %751 = vadd.xlane.f32.xlu0 %v750_v5 }
 0x3a1   : > { %v752_v6 = vpop.xlane.xlu0 %751 }
 0x3a2   : > { %1059 = vlog2.f32 %v752_v6 }
 0x3af   : > { %v1060_v7 = vpop.eup %1059 }
 0x3b0   : > { %v754_v8 = vmul.f32 0.6931472, %v1060_v7  ;;  %762 = sbr.rel (%p883_p13) target bundleno = 951 (0x3b7), region = 64 }
 0x3b2   : > { %v755_v9 = vsub.f32 %v747_v2, %v754_v8 }
 0x3b4   : > { %756 = vst [vmem:[%s1459_s28] sm:$0x1] %v755_v9 }
 0x3b5   : > { %vm765_vm2 = vcmp.lt.s32.totalorder %v470_v22, 128 }
 0x3b6   : > { %767 = vst.msk [vmem:[%s1539_s8] sm:$0x1] %vm765_vm2, %v655_v59  ;;  %768 = vst.msk [vmem:[%s1539_s8 + $0x1] sm:$0x1] %vm765_vm2, %v653_v56 }
 0x3b7 PF: > { %s884_s24 = sshll.u32 %s1342_s16, 4  ;;  %s782_s3 = sshll.u32 %s1459_s28, 4  ;;  %s783_s3 = int_to_ptr.vmem [resolvable:$true] %s782_s3 }
 0x3b8   : > { %s780_s27 = scalar_lea.hbm %s1538_s7, %s884_s24  ;;  %s770_s21 = scalar_lea.sflag [#allocation8], %s323_s25 }
 0x3b9   : > { %s1153_s19 = scalar_lea.vmem %s783_s3, 16  ;;  %p1565_p6 = scmp.ne.s32.totalorder %s1551_s23, 0 }
 0x3ba   : > { %p1154_p3 = scmp.ne.s32.totalorder %s783_s3, %s1153_s19  ;;  %s1259_s20 = smov [#allocation12]  }
 0x3bb   : > { %s1157_s11 = sshll.u32 %s1259_s20, 4  ;;  %s1158_s11 = int_to_ptr.vmem [resolvable:$false] %s1157_s11 }
 0x3bc   : > { %p1155_p0 = pnand %p1154_p3, %p1565_p6  ;;  %s1159_s26 = scalar_lea.vmem %s1158_s11, 32 }
 0x3bd   : > { %p1160_p9 = scmp.lt.s32.totalorder %s783_s3, %s1158_s11  ;;  %p1161_p12 = scmp.lt.s32.totalorder %s1159_s26, %s1153_s19 }
 0x3be   : > { %p1156_p2 = pneg %p1155_p0 }
 0x3bf   : > { %p1162_p7 = por %p1161_p12, %p1160_p9 }
 0x3c1   : > { %p1163_p10 = pnand %p1162_p7, %p1156_p2 }
 0x3c3   : > { %1166 = shalt.err (!%p1163_p10)
}
 0x3c4   : > { %s1167_s16 = scalar_lea.hbm %s780_s27, 16  ;;  %s1171_s29 = scalar_lea.hbm %s1538_s7, 128 }
 0x3c5   : > { %p1168_p11 = scmp.ne.s32.totalorder %s780_s27, %s1167_s16  ;;  %p1172_p4 = scmp.lt.s32.totalorder %s780_s27, %s1538_s7 }
 0x3c6   : > { %p1173_p1 = scmp.lt.s32.totalorder %s1171_s29, %s1167_s16 }
 0x3c7   : > { %p1169_p5 = pnand %p1168_p11, %p1565_p6 }
 0x3c8   : > { %p1174_p13 = por %p1173_p1, %p1172_p4 }
 0x3c9   : > { %p1170_p8 = pneg %p1169_p5 }
 0x3cb   : > { %p1175_p3 = pnand %p1174_p13, %p1170_p8 }
 0x3cd   : > { %1178 = shalt.err (!%p1175_p3)
}
 0x3ce   : > { %951 = dma.vmem_to_hbm [thread:$0]  (%p1565_p6), %s783_s3, 16, %s780_s27, %s770_s21  }
 0x3cf PF: > { %s1566_s9 = sld [smem:[#allocation21_spill]]  ;;  %p975_p0 = scmp.ge.s32.totalorder %s1247_s15, 2 }
 0x3d0   : > { %s800_s5 = sand.u32 1, %s1223_s10  }
 0x3d1   : > { %s801_s24 = scalar_lea.sflag [#allocation8], %s800_s5 }
 0x3d5   : > { %p1567_p2 = scmp.ne.s32.totalorder %s1566_s9, 0 }
 0x3d7   : > { %p967_p9 = pnand %p975_p0, %p1567_p2 }
 0x3d9   : > { %p968_p12 = pneg %p967_p9 }
 0x3db   : > { %1218 = dma.done.wait (%p968_p12), %s801_s24, 16  }
 0x3dc   : > { %1220 = vsyncadd (%p968_p12), %s801_s24, 4294967280  ;;  %s1568_s12 = sld [smem:[#allocation19_spill]]  ;;  %p29_p6 = scmp.ge.s32.totalorder %s1346_s18, 10  }
 0x3dd   : > { %s1569_s11 = sld [smem:[#allocation20_spill]]  ;;  %s1571_s10 = smov %s1227_s0 }
 0x3de   : > { %s1570_s23 = sld [smem:[#allocation22_spill]]  ;;  %s1576_s15 = smov %s1346_s18 }
 0x3e0   :  { %31 = sbr.rel (!%p29_p6) target bundleno = 24 (0x18), region = 113 }
 0x3e2   : > { %s1572_s0 = smov %s1568_s12  ;;  %s1573_s12 = smov %s1239_s13 }
 0x3e3   : > { %s1574_s13 = smov %s1243_s14 }
 0x3e4   : > { %s1575_s14 = smov %s1570_s23 }
 0x3e5   :  { %805 = vsyncpa [#allocation7], 1 }
 0x3e6   :  { %807 = vsyncpa [#allocation7 + $0x1], 1 }
 0x3e7   :  { %808 = vsyncpa [#allocation10], 1 }
 0x3e8   :  { %809 = vsyncpa [#allocation8], 1 }
 0x3e9   :  { %811 = vsyncpa [#allocation8 + $0x1], 1 }

</bundles_post_ra>
